<compile_context>
chip_gen: v7x
topology: tpu7x:2x2x1
jax: 0.10.0
libtpu: 0.0.40
codegen_flags: <defaults>
</compile_context>

<pallas_src>
import jax
import jax.numpy as jnp
from jax.experimental import pallas as pl
from jax.experimental.pallas import tpu as pltpu

LANE = 128            # lane width (last-dim tile)
SMALL_BATCH_MAX = 64  # <= this: single-block no-grid path
BATCH_TILE = 128      # batch tile for the gridded (training-batch) path


def mlp_kernel(x_ref, w1_ref, b1_ref, w2_ref, b2_ref, o_ref):
    # x_ref : (TB, D)  f32  flattened input tile
    # w1_ref: (D, H)   bf16
    # b1_ref: (1, H)   f32
    # w2_ref: (H, Ap)  f32, output lanes zero-padded to a multiple of 128
    # b2_ref: (1, Ap)  f32, zero-padded
    # o_ref : (TB, Ap) f32 lane-dense output (unmasked stores)
    x_bf = x_ref[...].astype(jnp.bfloat16)             # cast in-kernel (VPU)
    h = jnp.dot(x_bf, w1_ref[...], preferred_element_type=jnp.float32)
    h = jnp.maximum(h + b1_ref[...], 0.0)               # bias + ReLU in f32
    q = jnp.dot(h, w2_ref[...], preferred_element_type=jnp.float32)
    o_ref[...] = q + b2_ref[...]


def prepare_params(w1, b1, w2, b2):
    """One-time parameter layout prep (hoisted out of the forward path)."""
    D, H = w1.shape
    A = w2.shape[1]
    Ap = ((A + LANE - 1) // LANE) * LANE
    w1_bf = w1.astype(jnp.bfloat16)
    b1_2d = b1.astype(jnp.float32).reshape(1, H)
    w2_pad = jnp.pad(w2.astype(jnp.float32), ((0, 0), (0, Ap - A)))
    b2_pad = jnp.pad(b2.astype(jnp.float32).reshape(1, A), ((0, 0), (0, Ap - A)))
    return {"w1": w1_bf, "b1": b1_2d, "w2": w2_pad, "b2": b2_pad}


def _cost(B, D, H, Ap, weight_bytes):
    return pl.CostEstimate(
        flops=2 * B * D * H + 2 * B * H * Ap,
        transcendentals=0,
        bytes_accessed=weight_bytes + B * D * 4 + B * Ap * 4,
    )


def base_forward_prepared(x, params, *, num_actions):
    """Pallas-backed `Base.forward`: flatten -> Linear -> ReLU -> Linear."""
    w1, b1, w2, b2 = params["w1"], params["b1"], params["w2"], params["b2"]
    B = x.shape[0]
    x_flat = x.reshape(B, -1).astype(jnp.float32)   # torch: x.view(x.size(0), -1)
    D, H = w1.shape
    Ap = w2.shape[1]
    weight_bytes = w1.size * 2 + b1.size * 4 + w2.size * 4 + b2.size * 4

    if B <= SMALL_BATCH_MAX:
        # Single fully VMEM-resident block; no grid, no pipeline overhead.
        vmem = pl.BlockSpec(memory_space=pltpu.MemorySpace.VMEM)
        out = pl.pallas_call(
            mlp_kernel,
            out_shape=jax.ShapeDtypeStruct((B, Ap), jnp.float32),
            in_specs=[vmem] * 5,
            out_specs=vmem,
            cost_estimate=_cost(B, D, H, Ap, weight_bytes),
        )(x_flat, w1, b1, w2, b2)
        return out[:, :num_actions]

    # Training-batch path: batch-only grid; weights stay VMEM-resident across
    # all batch tiles (index_map (0, 0)); "parallel" batch axis shards across
    # v7x's two TensorCores.
    tb = BATCH_TILE
    Bp = ((B + tb - 1) // tb) * tb
    if Bp != B:
        x_flat = jnp.pad(x_flat, ((0, Bp - B), (0, 0)))
    out = pl.pallas_call(
        mlp_kernel,
        out_shape=jax.ShapeDtypeStruct((Bp, Ap), jnp.float32),
        grid_spec=pltpu.PrefetchScalarGridSpec(
            num_scalar_prefetch=0,
            grid=(Bp // tb,),
            in_specs=[
                pl.BlockSpec((tb, D), lambda i: (i, 0)),
                pl.BlockSpec((D, H), lambda i: (0, 0)),
                pl.BlockSpec((1, H), lambda i: (0, 0)),
                pl.BlockSpec((H, Ap), lambda i: (0, 0)),
                pl.BlockSpec((1, Ap), lambda i: (0, 0)),
            ],
            out_specs=pl.BlockSpec((tb, Ap), lambda i: (i, 0)),
        ),
        compiler_params=pltpu.CompilerParams(
            dimension_semantics=("parallel",)),
        cost_estimate=_cost(Bp, D, H, Ap, weight_bytes),
    )(x_flat, w1, b1, w2, b2)
    return out[:B, :num_actions]


if __name__ == "__main__":
    # Shapes consistent with the module:
    #   input_shape = (4, 16, 16)  -> feature_size = 1024
    #   hidden      = 128
    #   num_actions = 6
    B, C, Hh, Ww = 2, 4, 16, 16
    D = C * Hh * Ww
    HIDDEN = 128
    NUM_ACTIONS = 6

    key = jax.random.PRNGKey(0)
    kx, k1, k2, k3, k4 = jax.random.split(key, 5)

    x = jax.random.normal(kx, (B, C, Hh, Ww), dtype=jnp.float32)
    # Deterministic parameter init (uniform, roughly nn.Linear scale).
    lim1 = 1.0 / (D ** 0.5)
    lim2 = 1.0 / (HIDDEN ** 0.5)
    w1 = jax.random.uniform(k1, (D, HIDDEN), jnp.float32, -lim1, lim1)
    b1 = jax.random.uniform(k2, (HIDDEN,), jnp.float32, -lim1, lim1)
    w2 = jax.random.uniform(k3, (HIDDEN, NUM_ACTIONS), jnp.float32, -lim2, lim2)
    b2 = jax.random.uniform(k4, (NUM_ACTIONS,), jnp.float32, -lim2, lim2)

    # One-time weight layout prep (hoisted out of the per-call path).
    params = jax.block_until_ready(prepare_params(w1, b1, w2, b2))

    fwd = jax.jit(base_forward_prepared, static_argnames=("num_actions",))

    # --- small-batch (acting) path -------------------------------------
    out = jax.block_until_ready(fwd(x, params, num_actions=NUM_ACTIONS))
    assert out.shape == (B, NUM_ACTIONS)

    xf = x.reshape(B, -1)
    # Reference 1: precision-matched (x/w1 bf16, rest f32).
    h_ref = jnp.maximum(
        jnp.dot(xf.astype(jnp.bfloat16), w1.astype(jnp.bfloat16),
                preferred_element_type=jnp.float32) + b1, 0.0)
    ref_bf = jnp.dot(h_ref, w2, preferred_element_type=jnp.float32) + b2
    assert jnp.allclose(out, ref_bf, atol=2e-3, rtol=2e-3)
    # Reference 2: full-f32 semantics of the original module.
    ref_f32 = jnp.maximum(xf @ w1 + b1, 0.0) @ w2 + b2
    assert jnp.allclose(out, ref_f32, atol=5e-2, rtol=5e-2)

    # --- batched (training) path: exercises the batch grid --------------
    BB = 256
    xb = jax.random.normal(kx, (BB, C, Hh, Ww), dtype=jnp.float32)
    outb = jax.block_until_ready(fwd(xb, params, num_actions=NUM_ACTIONS))
    assert outb.shape == (BB, NUM_ACTIONS)
    refb = jnp.maximum(xb.reshape(BB, -1) @ w1 + b1, 0.0) @ w2 + b2
    assert jnp.allclose(outb, refb, atol=5e-2, rtol=5e-2)

    print("KERNEL_OK")
</pallas_src>

<mosaic_0001>
module attributes {stable_mosaic.version = 11 : i64} {
  func.func @mlp_kernel(%arg0: memref<2x1024xf32, #tpu.memory_space<vmem>>, %arg1: memref<1024x128xbf16, #tpu.memory_space<vmem>>, %arg2: memref<1x128xf32, #tpu.memory_space<vmem>>, %arg3: memref<128x128xf32, #tpu.memory_space<vmem>>, %arg4: memref<1x128xf32, #tpu.memory_space<vmem>>, %arg5: memref<2x128xf32, #tpu.memory_space<vmem>>) attributes {dimension_semantics = [], scalar_prefetch = 0 : i64, scratch_operands = 0 : i64, tpu.core_type = #tpu.core_type<tc>} {
    %c0 = arith.constant 0 : index
    %c0_0 = arith.constant 0 : index
    %0 = vector.load %arg0[%c0, %c0_0] : memref<2x1024xf32, #tpu.memory_space<vmem>>, vector<2x1024xf32>
    %1 = arith.truncf %0 : vector<2x1024xf32> to vector<2x1024xbf16>
    %c0_1 = arith.constant 0 : index
    %c0_2 = arith.constant 0 : index
    %2 = vector.load %arg1[%c0_1, %c0_2] : memref<1024x128xbf16, #tpu.memory_space<vmem>>, vector<1024x128xbf16>
    %cst = arith.constant dense<0.000000e+00> : vector<2x128xf32>
    %3 = tpu.matmul %1, %2, %cst {dimension_numbers = #tpu.dot_dimension_numbers<[1], [0], [0], [1], [0, 0, 1, 1], [], []>} : vector<2x1024xbf16>, vector<1024x128xbf16>, vector<2x128xf32> -> vector<2x128xf32>
    %c0_3 = arith.constant 0 : index
    %c0_4 = arith.constant 0 : index
    %4 = vector.load %arg2[%c0_3, %c0_4] : memref<1x128xf32, #tpu.memory_space<vmem>>, vector<1x128xf32>
    %5 = vector.broadcast %4 : vector<1x128xf32> to vector<2x128xf32>
    %6 = arith.addf %3, %5 : vector<2x128xf32>
    %cst_5 = arith.constant 0.000000e+00 : f32
    %7 = vector.broadcast %cst_5 : f32 to vector<2x128xf32>
    %8 = arith.maximumf %6, %7 : vector<2x128xf32>
    %c0_6 = arith.constant 0 : index
    %c0_7 = arith.constant 0 : index
    %9 = vector.load %arg3[%c0_6, %c0_7] : memref<128x128xf32, #tpu.memory_space<vmem>>, vector<128x128xf32>
    %cst_8 = arith.constant dense<0.000000e+00> : vector<2x128xf32>
    %10 = tpu.matmul %8, %9, %cst_8 {dimension_numbers = #tpu.dot_dimension_numbers<[1], [0], [0], [1], [0, 0, 1, 1], [], []>} : vector<2x128xf32>, vector<128x128xf32>, vector<2x128xf32> -> vector<2x128xf32>
    %c0_9 = arith.constant 0 : index
    %c0_10 = arith.constant 0 : index
    %11 = vector.load %arg4[%c0_9, %c0_10] : memref<1x128xf32, #tpu.memory_space<vmem>>, vector<1x128xf32>
    %12 = vector.broadcast %11 : vector<1x128xf32> to vector<2x128xf32>
    %13 = arith.addf %10, %12 : vector<2x128xf32>
    %c0_11 = arith.constant 0 : index
    %c0_12 = arith.constant 0 : index
    %14 = vector.load %arg5[%c0_11, %c0_12] : memref<2x128xf32, #tpu.memory_space<vmem>>, vector<2x128xf32>
    tpu.vector_store %arg5[%c0_11, %c0_12], %13 {strides = array<i32>} : memref<2x128xf32, #tpu.memory_space<vmem>>, vector<2x128xf32>,
    return
  }
}

</mosaic_0001>

<bundles_post_ra>
// kernel: base_forward_prepared.1
= control target key start
LH: loop header
LB: loop body
LE: loop exit
PB: predicated region body
PF: predicated region fallthrough
CT: control target
= control target key end

     0   :  { %10 = vsyncpa [#allocation3], 0  ;;  %s1359_s0 = inlined_call_operand.vmem [shape: f32[2,1024], index: 0, kind: input, shape index: {}]   ;;  %s1360_s1 = inlined_call_operand.hbm [shape: bf16[1024,128], index: 1, kind: input, shape index: {}]   ;;  %s1361_s2 = inlined_call_operand.vmem [shape: f32[1,128], index: 2, kind: input, shape index: {}]   ;;  %s1362_s3 = inlined_call_operand.vmem [shape: f32[128,128], index: 3, kind: input, shape index: {}]   ;;  %s1363_s4 = inlined_call_operand.vmem [shape: f32[1,128], index: 4, kind: input, shape index: {}]   ;;  %s1364_s5 = inlined_call_operand.hbm [shape: f32[2,128], index: 5, kind: output, shape index: {}]  }
   0x1   :  { %11 = vsyncpa [#allocation4], 0  ;;  %s1231_s18 = smov [#allocation2]   ;;  %s1183_s22 = scalar_lea.hbm %s1360_s1, 8192 }
   0x2   :  { %s19_s19 = sshll.u32 %s1231_s18, 4  ;;  %p1184_p0 = scmp.ne.s32.totalorder %s1360_s1, %s1183_s22  ;;  %s20_s19 = int_to_ptr.vmem [resolvable:$true] %s19_s19 }
   0x3   :  { %p1187_p1 = scmp.lt.u32.totalorder %s1183_s22, %s1360_s1 }
   0x5   :  { %p1189_p2 = pnand %p1187_p1, %p1184_p0 }
   0x7   :  { %1192 = shalt.err (!%p1189_p2)
}
   0x8   :  { %s1193_s27 = scalar_lea.vmem %s20_s19, 8192  ;;  %p1198_p4 = scmp.lt.s32.totalorder %s20_s19, %s20_s19 }
   0x9   :  { %p1194_p3 = scmp.ne.s32.totalorder %s20_s19, %s1193_s27  ;;  %p1199_p5 = scmp.lt.s32.totalorder %s1193_s27, %s1193_s27 }
   0xb   :  { %p1200_p6 = por %p1199_p5, %p1198_p4 }
   0xd   :  { %p1201_p7 = pnand %p1200_p6, %p1194_p3 }
   0xf   :  { %1204 = shalt.err (!%p1201_p7)
}
  0x10   :  { %s1232_s28 = smov 64   ;;  %s1233_s29 = smov 4  }
  0x11   :  { %25 = dma.hbm_to_vmem [thread:$0]  %s1360_s1, 8192, %s20_s19, [#allocation3], %s1232_s28, %s1232_s28, %s1233_s29  }
  0x12   :  { %1227 = dma.done.wait [#allocation3], 8192  }
  0x13   :  { %1228 = vsyncadd [#allocation3], 4294959104  ;;  %v1117_v0 = vld [vmem:[#allocation2 + $0x40] sm:$0xff]   ;;  %v1121_v4 = vld [vmem:[#allocation2 + $0x48] sm:$0xff]   ;;  %v1234_v22 = vmov 1983009808   ;;  %v44_v24 = vlaneseq }
  0x14   :  { %v1118_v1 = vld [vmem:[#allocation2 + $0xc0] sm:$0xff]   ;;  %945 = vmatprep.subr.bf16.mxu0 %v1117_v0  ;;  %v1122_v5 = vld [vmem:[#allocation2 + $0xc8] sm:$0xff]   ;;  %v1125_v8 = vld [vmem:[#allocation2 + $0x50] sm:$0xff]   ;;  %v42_v23 = vunpack.c.l.s4 %v1234_v22  ;;  %vm1236_vm0 = vmmov 0   ;;  %s1238_s16 = smov [#allocation5]  }
  0x15   :  { %v1119_v2 = vld [vmem:[#allocation2] sm:$0xff]   ;;  %967 = vmatprep.subr.bf16.mxu1 %v1118_v1  ;;  %v1123_v6 = vld [vmem:[#allocation2 + $0x8] sm:$0xff]   ;;  %v1126_v9 = vld [vmem:[#allocation2 + $0xd0] sm:$0xff]   ;;  %v45_v30 = vshrl.u32 %v44_v24, 7  ;;  %s870_s17 = sshll.u32 %s1238_s16, 4  ;;  %s871_s17 = int_to_ptr.vmem [resolvable:$true] %s870_s17 }
  0x16   :  { %v1120_v3 = vld [vmem:[#allocation2 + $0x80] sm:$0xff]   ;;  %946 = vmatpush3.bf16.msra.mxu0 %v1119_v2  ;;  %v1124_v7 = vld [vmem:[#allocation2 + $0x88] sm:$0xff]   ;;  %v1127_v10 = vld [vmem:[#allocation2 + $0x10] sm:$0xff]   ;;  %v43_v29 = vunpack.c.0.s8 %v42_v23  ;;  %s1205_s18 = scalar_lea.vmem %s871_s17, 32  ;;  %p1210_p9 = scmp.lt.s32.totalorder %s871_s17, %s871_s17 }
  0x17   :  { %968 = vmatpush3.bf16.msra.mxu1 %v1120_v3  ;;  %947 = vmatprep.subr.bf16.mxu0 %v1121_v4  ;;  %v1128_v11 = vld [vmem:[#allocation2 + $0x90] sm:$0xff]   ;;  %v1129_v12 = vld [vmem:[#allocation2 + $0x58] sm:$0xff]   ;;  %v1133_v16 = vld [vmem:[#allocation2 + $0x60] sm:$0xff]   ;;  %p1206_p8 = scmp.ne.s32.totalorder %s871_s17, %s1205_s18  ;;  %p1211_p10 = scmp.lt.s32.totalorder %s1205_s18, %s1205_s18 }
  0x18   :  { %969 = vmatprep.subr.bf16.mxu1 %v1122_v5  ;;  %v1130_v13 = vld [vmem:[#allocation2 + $0xd8] sm:$0xff]   ;;  %v1134_v17 = vld [vmem:[#allocation2 + $0xe0] sm:$0xff]   ;;  %v1137_v20 = vld [vmem:[#allocation2 + $0x68] sm:$0xff]   ;;  %v1281_v35 = vsub.s32 %v43_v29, %v45_v30  ;;  %v1235_v29 = vmov 0.0|0.0  }
  0x19   :  { %v1131_v14 = vld [vmem:[#allocation2 + $0x18] sm:$0xff]   ;;  %v1135_v18 = vld [vmem:[#allocation2 + $0x20] sm:$0xff]   ;;  %v1138_v21 = vld [vmem:[#allocation2 + $0xe8] sm:$0xff]   ;;  %p1212_p11 = por %p1211_p10, %p1210_p9 }
  0x1a   :  { %948 = vmatpush3.bf16.msra.mxu0 %v1123_v6  ;;  %v1132_v15 = vld [vmem:[#allocation2 + $0x98] sm:$0xff]   ;;  %v1136_v19 = vld [vmem:[#allocation2 + $0xa0] sm:$0xff]   ;;  %v1139_v25 = vld [vmem:[#allocation2 + $0x28] sm:$0xff]  }
  0x1b   :  { %970 = vmatpush3.bf16.msra.mxu1 %v1124_v7  ;;  %949 = vmatprep.subr.bf16.mxu0 %v1125_v8  ;;  %v1140_v26 = vld [vmem:[#allocation2 + $0xa8] sm:$0xff]   ;;  %v1141_v27 = vld [vmem:[#allocation2 + $0x70] sm:$0xff]   ;;  %v1145_v33 = vld [vmem:[#allocation2 + $0x78] sm:$0xff]   ;;  %p1213_p12 = pnand %p1212_p11, %p1206_p8 }
  0x1c   :  { %971 = vmatprep.subr.bf16.mxu1 %v1126_v9  ;;  %v1142_v28 = vld [vmem:[#allocation2 + $0xf0] sm:$0xff]   ;;  %v1146_v34 = vld [vmem:[#allocation2 + $0xf8] sm:$0xff]   ;;  %v36_v38 = vld [vmem:[%s1359_s0] sm:$0xff] }
  0x1d   :  { %v1143_v31 = vld [vmem:[#allocation2 + $0x30] sm:$0xff]   ;;  %v1147_v36 = vld [vmem:[#allocation2 + $0x38] sm:$0xff]   ;;  %v47_v39 = vrot.slane %v36_v38, %v1281_v35  ;;  %v40_v40 = vcombine.high %v36_v38, %v36_v38  ;;  %v1150_v41 = vld [vmem:[#allocation2 + $0x140] sm:$0xff]  }
  0x1e   :  { %950 = vmatpush3.bf16.msra.mxu0 %v1127_v10  ;;  %v1144_v32 = vld [vmem:[#allocation2 + $0xb0] sm:$0xff]   ;;  %v1148_v37 = vld [vmem:[#allocation2 + $0xb8] sm:$0xff]   ;;  %v1151_v42 = vld [vmem:[#allocation2 + $0x1c0] sm:$0xff]  }
  0x1f   :  { %972 = vmatpush3.bf16.msra.mxu1 %v1128_v11  ;;  %951 = vmatprep.subr.bf16.mxu0 %v1129_v12  ;;  %v55_v43 = vcombine.high %v47_v39, %v47_v39  ;;  %v54_v44 = vrot.slane %v40_v40, %v1281_v35  ;;  %v82_v45 = vpack.c.bf16 %v47_v39, %v47_v39  ;;  %v1152_v48 = vld [vmem:[#allocation2 + $0x100] sm:$0xff]   ;;  %v1154_v50 = vld [vmem:[#allocation2 + $0x148] sm:$0xff]   ;;  %v1158_v55 = vld [vmem:[#allocation2 + $0x150] sm:$0xff]  }
  0x20   :  { %973 = vmatprep.subr.bf16.mxu1 %v1130_v13  ;;  %v1153_v52 = vld [vmem:[#allocation2 + $0x180] sm:$0xff]   ;;  %v1155_v53 = vld [vmem:[#allocation2 + $0x1c8] sm:$0xff]   ;;  %v1159_v57 = vld [vmem:[#allocation2 + $0x1d0] sm:$0xff]  }
  0x21   :  { %v83_v46 = vpack.c.bf16 %v55_v43, %v55_v43  ;;  %v56_v47 = vcombine.high %v54_v44, %v54_v44  ;;  %v84_v49 = vpack.c.bf16 %v54_v44, %v54_v44  ;;  %v1156_v54 = vld [vmem:[#allocation2 + $0x108] sm:$0xff]   ;;  %v1160_v58 = vld [vmem:[#allocation2 + $0x110] sm:$0xff]   ;;  %v1162_v59 = vld [vmem:[#allocation2 + $0x158] sm:$0xff]  }
  0x22   :  { %952 = vmatpush3.bf16.msra.mxu0 %v1131_v14  ;;  %v1157_v56 = vld [vmem:[#allocation2 + $0x188] sm:$0xff]   ;;  %v1161_v60 = vld [vmem:[#allocation2 + $0x190] sm:$0xff]   ;;  %v1163_v61 = vld [vmem:[#allocation2 + $0x1d8] sm:$0xff]  }
  0x23   :  { %974 = vmatpush3.bf16.msra.mxu1 %v1132_v15  ;;  %953 = vmatprep.subr.bf16.mxu0 %v1133_v16  ;;  %v85_v51 = vpack.c.bf16 %v56_v47, %v56_v47  ;;  %v1164_v62 = vld [vmem:[#allocation2 + $0x118] sm:$0xff]   ;;  %v1166_v63 = vld [vmem:[#allocation2 + $0x160] sm:$0xff]   ;;  %v1170_v3 = vld [vmem:[#allocation2 + $0x168] sm:$0xff]  }
  0x24   :  { %975 = vmatprep.subr.bf16.mxu1 %v1134_v17  ;;  %641 = vmatprep.mubr.bf16.mxu0 %v83_v46  ;;  %v1165_v0 = vld [vmem:[#allocation2 + $0x198] sm:$0xff]   ;;  %v1167_v1 = vld [vmem:[#allocation2 + $0x1e0] sm:$0xff]   ;;  %v1171_v5 = vld [vmem:[#allocation2 + $0x1e8] sm:$0xff]  }
  0x25   :  { %681 = vmatprep.mubr.bf16.mxu1 %v85_v51  ;;  %v1168_v2 = vld [vmem:[#allocation2 + $0x120] sm:$0xff]   ;;  %v1172_v6 = vld [vmem:[#allocation2 + $0x128] sm:$0xff]   ;;  %v1174_v7 = vld [vmem:[#allocation2 + $0x170] sm:$0xff]   ;;  %v1237_v51 = vmov 0.0  }
  0x26   :  { %954 = vmatpush3.bf16.msra.mxu0 %v1135_v18  ;;  %v1169_v4 = vld [vmem:[#allocation2 + $0x1a0] sm:$0xff]   ;;  %v1173_v8 = vld [vmem:[#allocation2 + $0x1a8] sm:$0xff]   ;;  %v1175_v9 = vld [vmem:[#allocation2 + $0x1f0] sm:$0xff]  }
  0x27   :  { %976 = vmatpush3.bf16.msra.mxu1 %v1136_v19  ;;  %955 = vmatprep.subr.bf16.mxu0 %v1137_v20  ;;  %v1176_v10 = vld [vmem:[#allocation2 + $0x130] sm:$0xff]   ;;  %v1178_v11 = vld [vmem:[#allocation2 + $0x178] sm:$0xff]   ;;  %v37_v14 = vld [vmem:[%s1359_s0 + $0x8] sm:$0xff] }
  0x28   :  { %977 = vmatprep.subr.bf16.mxu1 %v1138_v21  ;;  %v1177_v12 = vld [vmem:[#allocation2 + $0x1b0] sm:$0xff]   ;;  %v1179_v13 = vld [vmem:[#allocation2 + $0x1f8] sm:$0xff]   ;;  %v64_v16 = vrot.slane %v37_v14, %v1281_v35  ;;  %v57_v17 = vcombine.high %v37_v14, %v37_v14  ;;  %v778_v39 = vld [vmem:[%s1362_s3 + $0x40] sm:$0xff] }
  0x29   :  { %v1180_v15 = vld [vmem:[#allocation2 + $0x138] sm:$0xff]   ;;  %v779_v40 = vld [vmem:[%s1362_s3 + $0x48] sm:$0xff]  ;;  %v944_v14 = vld [vmem:[%s1363_s4] ss:$0 sm:$0xff] }
  0x2a   :  { %956 = vmatpush3.bf16.msra.mxu0 %v1139_v25  ;;  %v1181_v18 = vld [vmem:[#allocation2 + $0x1b8] sm:$0xff]   ;;  %v72_v19 = vcombine.high %v64_v16, %v64_v16  ;;  %v71_v20 = vrot.slane %v57_v17, %v1281_v35  ;;  %v86_v21 = vpack.c.bf16 %v64_v16, %v64_v16  ;;  %v783_v46 = vld [vmem:[%s1362_s3 + $0x68] sm:$0xff] }
  0x2b   :  { %978 = vmatpush3.bf16.msra.mxu1 %v1140_v26  ;;  %957 = vmatprep.subr.bf16.mxu0 %v1141_v27  ;;  %v770_v26 = vld [vmem:[%s1362_s3] sm:$0xff]  ;;  %v771_v27 = vld [vmem:[%s1362_s3 + $0x8] sm:$0xff]  ;;  %v781_v43 = vld [vmem:[%s1362_s3 + $0x58] sm:$0xff] }
  0x2c   :  { %979 = vmatprep.subr.bf16.mxu1 %v1142_v28  ;;  %v87_v22 = vpack.c.bf16 %v72_v19, %v72_v19  ;;  %v73_v23 = vcombine.high %v71_v20, %v71_v20  ;;  %v88_v24 = vpack.c.bf16 %v71_v20, %v71_v20  ;;  %v772_v28 = vld [vmem:[%s1362_s3 + $0x10] sm:$0xff]  ;;  %v1086_v30 = vpack.c.bf16 %v771_v27, %v770_v26 }
  0x2e   :  { %958 = vmatpush3.bf16.msra.mxu0 %v1143_v31  ;;  %v89_v25 = vpack.c.bf16 %v73_v23, %v73_v23  ;;  %v773_v31 = vld [vmem:[%s1362_s3 + $0x18] sm:$0xff] }
  0x2f   :  { %980 = vmatpush3.bf16.msra.mxu1 %v1144_v32  ;;  %959 = vmatprep.subr.bf16.mxu0 %v1145_v33  ;;  %v1089_v32 = vpack.c.bf16 %v773_v31, %v772_v28  ;;  %v774_v33 = vld [vmem:[%s1362_s3 + $0x20] sm:$0xff] }
  0x30   :  { %981 = vmatprep.subr.bf16.mxu1 %v1146_v34  ;;  %v775_v34 = vld [vmem:[%s1362_s3 + $0x28] sm:$0xff] }
  0x31   :  { %v1092_v35 = vpack.c.bf16 %v775_v34, %v774_v33 }
  0x32   :  { %960 = vmatpush3.bf16.msra.mxu0 %v1147_v36  ;;  %v776_v36 = vld [vmem:[%s1362_s3 + $0x30] sm:$0xff] }
  0x33   :  { %982 = vmatpush3.bf16.msra.mxu1 %v1148_v37  ;;  %989 = vmatprep.subr.bf16.mxu0 %v1150_v41  ;;  %v777_v37 = vld [vmem:[%s1362_s3 + $0x38] sm:$0xff]  ;;  %v1098_v41 = vpack.c.bf16 %v779_v40, %v778_v39 }
  0x34   :  { %1011 = vmatprep.subr.bf16.mxu1 %v1151_v42  ;;  %v1095_v38 = vpack.c.bf16 %v777_v37, %v776_v36  ;;  %v780_v42 = vld [vmem:[%s1362_s3 + $0x50] sm:$0xff] }
  0x35   :  { %642 = vmatmul.mubr.bf16.vlgmr.msra.gmra.mrb[0].mxu0 %v82_v45  ;;  %v1101_v44 = vpack.c.bf16 %v781_v43, %v780_v42  ;;  %v782_v45 = vld [vmem:[%s1362_s3 + $0x60] sm:$0xff] }
  0x36   :  { %990 = vmatpush3.bf16.msra.mxu0 %v1152_v48  ;;  %682 = vmatmul.mubr.bf16.vlgmr.msra.gmra.mrb[0].mxu1 %v84_v49  ;;  %v1104_v47 = vpack.c.bf16 %v783_v46, %v782_v45  ;;  %v784_v48 = vld [vmem:[%s1362_s3 + $0x70] sm:$0xff]  ;;  %v785_v49 = vld [vmem:[%s1362_s3 + $0x78] sm:$0xff] }
  0x37   :  { %991 = vmatprep.subr.bf16.mxu0 %v1154_v50  ;;  %1012 = vmatpush3.bf16.msra.mxu1 %v1153_v52  ;;  %v1107_v50 = vpack.c.bf16 %v785_v49, %v784_v48 }
  0x38   :  { %1013 = vmatprep.subr.bf16.mxu1 %v1155_v53  ;;  %721 = vmatprep.mubr.bf16.mxu0 %v87_v22  ;;  %v879_v53 = vld [vmem:[%s1361_s2] ss:$0 sm:$0xff] }
  0x39   :  { %761 = vmatprep.mubr.bf16.mxu1 %v89_v25 }
  0x3a   :  { %992 = vmatpush3.bf16.msra.mxu0 %v1156_v54 }
  0x3b   :  { %993 = vmatprep.subr.bf16.mxu0 %v1158_v55  ;;  %1014 = vmatpush3.bf16.msra.mxu1 %v1157_v56 }
  0x3c   :  { %1015 = vmatprep.subr.bf16.mxu1 %v1159_v57 }
  0x3e   :  { %994 = vmatpush3.bf16.msra.mxu0 %v1160_v58 }
  0x3f   :  { %995 = vmatprep.subr.bf16.mxu0 %v1162_v59  ;;  %1016 = vmatpush3.bf16.msra.mxu1 %v1161_v60 }
  0x40   :  { %1017 = vmatprep.subr.bf16.mxu1 %v1163_v61 }
  0x42   :  { %996 = vmatpush3.bf16.msra.mxu0 %v1164_v62 }
  0x43   :  { %997 = vmatprep.subr.bf16.mxu0 %v1166_v63  ;;  %1018 = vmatpush3.bf16.msra.mxu1 %v1165_v0 }
  0x44   :  { %1019 = vmatprep.subr.bf16.mxu1 %v1167_v1 }
  0x46   :  { %998 = vmatpush3.bf16.msra.mxu0 %v1168_v2 }
  0x47   :  { %999 = vmatprep.subr.bf16.mxu0 %v1170_v3  ;;  %1020 = vmatpush3.bf16.msra.mxu1 %v1169_v4 }
  0x48   :  { %1021 = vmatprep.subr.bf16.mxu1 %v1171_v5 }
  0x4a   :  { %1000 = vmatpush3.bf16.msra.mxu0 %v1172_v6 }
  0x4b   :  { %1001 = vmatprep.subr.bf16.mxu0 %v1174_v7  ;;  %1022 = vmatpush3.bf16.msra.mxu1 %v1173_v8 }
  0x4c   :  { %1023 = vmatprep.subr.bf16.mxu1 %v1175_v9 }
  0x4e   :  { %1002 = vmatpush3.bf16.msra.mxu0 %v1176_v10 }
  0x4f   :  { %1003 = vmatprep.subr.bf16.mxu0 %v1178_v11  ;;  %1024 = vmatpush3.bf16.msra.mxu1 %v1177_v12 }
  0x50   :  { %1025 = vmatprep.subr.bf16.mxu1 %v1179_v13 }
  0x52   :  { %1004 = vmatpush3.bf16.msra.mxu0 %v1180_v15 }
  0x53   :  { %1026 = vmatpush3.bf16.msra.mxu1 %v1181_v18  ;;  %1085 = vmatprep.subr.bf16.mxu0 %v1235_v29 }
  0x55   :  { %722 = vmatmul.mubr.bf16.vlgmr.msra.gmra.mrb[4].mxu0 %v86_v21 }
  0x56   :  { %762 = vmatmul.mubr.bf16.vlgmr.msra.gmra.mrb[4].mxu1 %v88_v24  ;;  %1087 = vmatpush3.bf16.msra.mxu0 %v1086_v30 }
  0x57   :  { %1088 = vmatprep.subr.bf16.mxu0 %v1235_v29  ;;  %1082 = vmatprep.mubr.msk.f32.mxu0 %vm1236_vm0, %v1237_v51 }
  0x5a   :  { %1090 = vmatpush3.bf16.msra.mxu0 %v1089_v32 }
  0x5b   :  { %1091 = vmatprep.subr.bf16.mxu0 %v1235_v29 }
  0x5e   :  { %1093 = vmatpush3.bf16.msra.mxu0 %v1092_v35 }
  0x5f   :  { %1094 = vmatprep.subr.bf16.mxu0 %v1235_v29 }
  0x62   :  { %1096 = vmatpush3.bf16.msra.mxu0 %v1095_v38 }
  0x63   :  { %1097 = vmatprep.subr.bf16.mxu0 %v1235_v29 }
  0x66   :  { %1099 = vmatpush3.bf16.msra.mxu0 %v1098_v41 }
  0x67   :  { %1100 = vmatprep.subr.bf16.mxu0 %v1235_v29 }
  0x6a   :  { %1102 = vmatpush3.bf16.msra.mxu0 %v1101_v44 }
  0x6b   :  { %1103 = vmatprep.subr.bf16.mxu0 %v1235_v29 }
  0x6e   :  { %1105 = vmatpush3.bf16.msra.mxu0 %v1104_v47 }
  0x6f   :  { %1106 = vmatprep.subr.bf16.mxu0 %v1235_v29 }
  0x72   :  { %1108 = vmatpush3.bf16.msra.mxu0 %v1107_v50 }
 0x108   :  { %v961_v52 = vpop.f32.mrb[0].mxu0 }
 0x109   :  { %v962_v54 = vpop.f32.mrb[1].mxu0  ;;  %v983_v55 = vpop.f32.mrb[0].mxu1 }
 0x10a   :  { %v963_v56 = vadd.f32 %v962_v54, %v961_v52  ;;  %v964_v57 = vpop.f32.mrb[2].mxu0  ;;  %v984_v58 = vpop.f32.mrb[1].mxu1 }
 0x10b   :  { %v965_v59 = vpop.f32.mrb[3].mxu0  ;;  %v985_v61 = vadd.f32 %v984_v58, %v983_v55  ;;  %v986_v62 = vpop.f32.mrb[2].mxu1 }
 0x10c   :  { %v644_v60 = vadd.f32 %v963_v56, %v879_v53  ;;  %v987_v63 = vpop.f32.mrb[3].mxu1 }
 0x10e   :  { %v684_v0 = vadd.f32 %v985_v61, %v644_v60 }
 0x128   :  { %v1005_v1 = vpop.f32.mrb[4].mxu0 }
 0x129   :  { %v1006_v2 = vpop.f32.mrb[5].mxu0  ;;  %v1027_v3 = vpop.f32.mrb[4].mxu1 }
 0x12a   :  { %v1007_v4 = vadd.f32 %v1006_v2, %v1005_v1  ;;  %v1008_v5 = vpop.f32.mrb[6].mxu0  ;;  %v1028_v6 = vpop.f32.mrb[5].mxu1 }
 0x12b   :  { %v1009_v7 = vpop.f32.mrb[7].mxu0  ;;  %v1029_v9 = vadd.f32 %v1028_v6, %v1027_v3  ;;  %v1030_v10 = vpop.f32.mrb[6].mxu1 }
 0x12c   :  { %v724_v8 = vadd.f32 %v1007_v4, %v684_v0  ;;  %v1031_v11 = vpop.f32.mrb[7].mxu1 }
 0x12e   :  { %v764_v12 = vadd.f32 %v1029_v9, %v724_v8 }
 0x130   :  { %v769_v13 = vmax.f32 %v764_v12, 0.0 }
 0x132   :  { %1083 = vmatmul.mubr.f32.vlgmr.msra.gmra.mrb[8].mxu0 %v769_v13 }
 0x205   :  { %v859_v15 = vpop.f32.mrb[8].mxu0 }
 0x206   :  { %v860_v16 = vadd.f32 %v944_v14, %v859_v15  ;;  %v1084_v17 = vpop.f32.mrb[9].mxu0 }
 0x208   :  { %863 = vst [vmem:[#allocation5] sm:$0x3] %v860_v16 }
 0x209   :  { %1216 = shalt.err (!%p1213_p12)
}
 0x20a   :  { %s1217_s21 = scalar_lea.hbm %s1364_s5, 32 }
 0x20b   :  { %p1218_p13 = scmp.ne.s32.totalorder %s1364_s5, %s1217_s21  ;;  %p1221_p0 = scmp.lt.u32.totalorder %s1217_s21, %s1364_s5 }
 0x20d   :  { %p1223_p1 = pnand %p1221_p0, %p1218_p13 }
 0x20f   :  { %1226 = shalt.err (!%p1223_p1)
}
 0x210   :  { %873 = dma.vmem_to_hbm [thread:$0]  %s871_s17, 32, %s1364_s5, [#allocation4]  }
 0x211   :  { %1229 = dma.done.wait [#allocation4], 32  }
 0x212   :  { %1230 = vsyncadd [#allocation4], 4294967264 }
 0x213   :  { %877 = vsyncpa [#allocation3], 1 }
 0x214   :  { %878 = vsyncpa [#allocation4], 1 }

</bundles_post_ra>
